<compile_context>
chip_gen: v7x
topology: tpu7x:2x2x1
jax: 0.10.0
libtpu: 0.0.40
codegen_flags: <defaults>
</compile_context>

<pallas_src>
import functools

import jax
import jax.numpy as jnp
from jax import lax
from jax.experimental import pallas as pl
from jax.experimental.pallas import tpu as pltpu


def fused_gradcam_kernel(x_ref, mask_ref, w_ref, b_ref, wfc_ref, bfc_ref,
                         logits_ref, sel_ref, patches_ref, *, H, W, Wp):
    # x_ref:      (1, Cin, (H+2)*(W+2)+2)  halo-padded, flattened NCHW input (1 batch elt)
    # mask_ref:   (1, Q)                   1.0 on valid columns, 0.0 on the 2 pad cols/row
    # w_ref:      (Cout, 9*Cin)            conv weights, columns ordered (kh, kw, cin)
    # b_ref:      (Cout, 1)                conv bias
    # wfc_ref:    (K, Cout)                fc weight (transposed)
    # bfc_ref:    (K, 1)                   fc bias
    # logits_ref: (1, K, 1)                logits for this batch element
    # sel_ref:    (1, Cout, Q)             hooked-layer output (pre-ReLU), lane-dense
    # patches_ref:(9*Cin, Q)               VMEM scratch: staged im2col patch matrix
    Cin = x_ref.shape[1]
    Q = sel_ref.shape[2]               # = H * Wp  (wide spatial extent)

    x = x_ref[0]                       # (Cin, (H+2)*Wp + 2)

    # In-kernel im2col: every 3x3 tap is a contiguous lane slice of the
    # flattened padded image at offset kh*Wp + kw. Stage the 9 taps as rows of
    # one (9*Cin, Q) patch matrix so the conv is a single K=9*Cin MXU matmul.
    for t in range(9):                 # static unroll (9 taps)
        kh, kw = t // 3, t % 3
        off = kh * Wp + kw
        patches_ref[t * Cin:(t + 1) * Cin, :] = x[:, off:off + Q]
    patches = patches_ref[...]         # (9*Cin, Q)

    # Conv as one lane-dense MXU matmul (spatial on the 128-lane axis).
    acc = jnp.dot(w_ref[...], patches, preferred_element_type=jnp.float32)
    acc = acc + b_ref[...]             # (Cout, Q); bias broadcast over lanes

    # Hooked layer output (pre-ReLU conv activations), channel-major & lane-dense.
    sel_ref[0] = acc.astype(sel_ref.dtype)

    # ReLU -> masked global average pool (lane reduction over valid columns)
    # -> FC as one tiny MXU matvec.
    h = jnp.maximum(acc, 0.0) * mask_ref[...]
    pooled = jnp.sum(h, axis=1, keepdims=True) * (1.0 / (H * W))     # (Cout, 1)
    logits = jnp.dot(wfc_ref[...], pooled,
                     preferred_element_type=jnp.float32) + bfc_ref[...]  # (K, 1)
    logits_ref[0] = logits.astype(logits_ref.dtype)


def gradcam_forward(x_nchw, params):
    """Matches PyTorchGradCamModel.forward(x) -> (model(x), selected_out)."""
    w_conv, b_conv, w_fc, b_fc = params        # w_conv: HWIO (3, 3, Cin, Cout)
    N, Cin, H, W = x_nchw.shape
    Cout = w_conv.shape[-1]
    K = w_fc.shape[-1]
    Hp, Wp = H + 2, W + 2
    Q = H * Wp                                  # wide spatial extent (incl. pad cols)

    # Halo pad the spatial dims only (NCHW kept, channel dim untouched), flatten
    # (H+2, W+2) onto one lane axis, and add 2 tail zeros so every im2col tap is
    # a contiguous length-Q lane slice inside the kernel.
    x_pad = jnp.pad(x_nchw, ((0, 0), (0, 0), (1, 1), (1, 1)))
    x_flat = jnp.pad(x_pad.reshape(N, Cin, Hp * Wp), ((0, 0), (0, 0), (0, 2)))

    # Lane mask of valid (non-pad) columns for the global average pool.
    valid = ((jnp.arange(Q) % Wp) < W).astype(jnp.float32).reshape(1, Q)

    # Conv weight as (Cout, 9*Cin), column order (kh, kw, cin) == kernel's im2col rows.
    w_mat = jnp.transpose(w_conv, (3, 0, 1, 2)).reshape(Cout, 9 * Cin)
    b_col = b_conv.reshape(Cout, 1)
    w_fc_t = jnp.transpose(w_fc)               # (K, Cout)
    b_fc_col = b_fc.reshape(K, 1)

    kernel = functools.partial(fused_gradcam_kernel, H=H, W=W, Wp=Wp)

    flops = 2 * N * (Cout * 9 * Cin * Q + K * Cout)
    bytes_accessed = 4 * (x_flat.size + valid.size + w_mat.size + b_col.size
                          + w_fc_t.size + b_fc_col.size + N * Cout * Q + N * K)

    logits_nk1, sel_wide = pl.pallas_call(
        kernel,
        out_shape=(jax.ShapeDtypeStruct((N, K, 1), jnp.float32),
                   jax.ShapeDtypeStruct((N, Cout, Q), jnp.float32)),
        grid_spec=pltpu.PrefetchScalarGridSpec(
            num_scalar_prefetch=0,
            grid=(N,),
            in_specs=[
                pl.BlockSpec((1, Cin, Hp * Wp + 2), lambda n: (n, 0, 0)),
                pl.BlockSpec((1, Q), lambda n: (0, 0)),
                pl.BlockSpec((Cout, 9 * Cin), lambda n: (0, 0)),
                pl.BlockSpec((Cout, 1), lambda n: (0, 0)),
                pl.BlockSpec((K, Cout), lambda n: (0, 0)),
                pl.BlockSpec((K, 1), lambda n: (0, 0)),
            ],
            out_specs=[
                pl.BlockSpec((1, K, 1), lambda n: (n, 0, 0)),
                pl.BlockSpec((1, Cout, Q), lambda n: (n, 0, 0)),
            ],
            scratch_shapes=[pltpu.VMEM((9 * Cin, Q), jnp.float32)],
        ),
        compiler_params=pltpu.CompilerParams(
            dimension_semantics=("parallel",)),       # v7x: batch elts on both TCs
        cost_estimate=pl.CostEstimate(
            flops=flops, transcendentals=0, bytes_accessed=bytes_accessed),
    )(x_flat, valid, w_mat, b_col, w_fc_t, b_fc_col)

    logits = logits_nk1[:, :, 0]                                    # (N, K)
    # Already channel-major: just drop the 2 pad columns per row -> NCHW.
    selected_out = sel_wide.reshape(N, Cout, H, Wp)[:, :, :, :W]
    return logits, selected_out
    # TODO(synk): the backward hook (activations_hook capturing d(selected_out))
    # has no forward-pass equivalent; gradients come from jax.grad/jax.vjp here.


if __name__ == "__main__":
    # Shapes: batch=2, in-channels=4, spatial=16x16, conv-out=8, classes=10.
    N, Cin, H, W = 2, 4, 16, 16
    Cout, K = 8, 10

    key = jax.random.PRNGKey(0)
    k1, k2, k3, k4, k5 = jax.random.split(key, 5)
    x = jax.random.normal(k1, (N, Cin, H, W), jnp.float32)

    # Deterministic synthetic parameters (conv weights HWIO, fc input-major).
    w_conv = 0.1 * jax.random.normal(k2, (3, 3, Cin, Cout), jnp.float32)
    b_conv = 0.05 * jax.random.normal(k3, (Cout,), jnp.float32)
    w_fc = 0.1 * jax.random.normal(k4, (Cout, K), jnp.float32)
    b_fc = 0.05 * jax.random.normal(k5, (K,), jnp.float32)
    params = (w_conv, b_conv, w_fc, b_fc)

    logits, selected_out = jax.jit(gradcam_forward)(x, params)
    logits = jax.block_until_ready(logits)
    selected_out = jax.block_until_ready(selected_out)

    # Pure-JAX reference for correctness.
    x_nhwc = jnp.transpose(x, (0, 2, 3, 1))
    ref_act = lax.conv_general_dilated(
        x_nhwc, w_conv, window_strides=(1, 1), padding="SAME",
        dimension_numbers=("NHWC", "HWIO", "NHWC")) + b_conv
    ref_logits = jnp.mean(jnp.maximum(ref_act, 0.0), axis=(1, 2)) @ w_fc + b_fc
    ref_selected = jnp.transpose(ref_act, (0, 3, 1, 2))

    assert logits.shape == (N, K)
    assert selected_out.shape == (N, Cout, H, W)
    assert jnp.allclose(logits, ref_logits, atol=1e-4, rtol=1e-4)
    assert jnp.allclose(selected_out, ref_selected, atol=1e-4, rtol=1e-4)

    print("KERNEL_OK")
</pallas_src>

<mosaic_0001>
module attributes {stable_mosaic.version = 11 : i64} {
  func.func @fused_gradcam_kernel(%arg0: i32, %arg1: memref<1x4x326xf32, #tpu.memory_space<vmem>>, %arg2: memref<1x288xf32, #tpu.memory_space<vmem>>, %arg3: memref<8x36xf32, #tpu.memory_space<vmem>>, %arg4: memref<8x1xf32, #tpu.memory_space<vmem>>, %arg5: memref<10x8xf32, #tpu.memory_space<vmem>>, %arg6: memref<10x1xf32, #tpu.memory_space<vmem>>, %arg7: memref<1x10x1xf32, #tpu.memory_space<vmem>>, %arg8: memref<1x8x288xf32, #tpu.memory_space<vmem>>, %arg9: memref<36x288xf32, #tpu.memory_space<vmem>>) attributes {dimension_semantics = [#tpu.dimension_semantics<parallel>], iteration_bounds = array<i64: 2>, scalar_prefetch = 0 : i64, scratch_operands = 1 : i64, tpu.core_type = #tpu.core_type<tc>, window_params = [{transform_indices = @transform_0, window_bounds = array<i64: 1, 4, 326>}, {pipeline_mode = #tpu.pipeline_mode<synchronous>, transform_indices = @transform_1, window_bounds = array<i64: 1, 288>}, {pipeline_mode = #tpu.pipeline_mode<synchronous>, transform_indices = @transform_2, window_bounds = array<i64: 8, 36>}, {pipeline_mode = #tpu.pipeline_mode<synchronous>, transform_indices = @transform_3, window_bounds = array<i64: 8, 1>}, {pipeline_mode = #tpu.pipeline_mode<synchronous>, transform_indices = @transform_4, window_bounds = array<i64: 10, 8>}, {pipeline_mode = #tpu.pipeline_mode<synchronous>, transform_indices = @transform_5, window_bounds = array<i64: 10, 1>}, {transform_indices = @transform_6, window_bounds = array<i64: 1, 10, 1>}, {transform_indices = @transform_7, window_bounds = array<i64: 1, 8, 288>}]} {
    %c0 = arith.constant 0 : index
    %c0_0 = arith.constant 0 : index
    %c0_1 = arith.constant 0 : index
    %0 = vector.load %arg1[%c0, %c0_0, %c0_1] : memref<1x4x326xf32, #tpu.memory_space<vmem>>, vector<1x4x326xf32>
    %1 = vector.shape_cast %0 : vector<1x4x326xf32> to vector<4x326xf32>
    %2 = vector.extract_strided_slice %1 {offsets = [0, 0], sizes = [4, 288], strides = [1, 1]} : vector<4x326xf32> to vector<4x288xf32>
    %c0_2 = arith.constant 0 : index
    %c0_3 = arith.constant 0 : index
    %3 = vector.load %arg9[%c0_2, %c0_3] : memref<36x288xf32, #tpu.memory_space<vmem>>, vector<4x288xf32>
    tpu.vector_store %arg9[%c0_2, %c0_3], %2 {strides = array<i32>} : memref<36x288xf32, #tpu.memory_space<vmem>>, vector<4x288xf32>,
    %4 = vector.extract_strided_slice %1 {offsets = [0, 1], sizes = [4, 288], strides = [1, 1]} : vector<4x326xf32> to vector<4x288xf32>
    %c4 = arith.constant 4 : index
    %c0_4 = arith.constant 0 : index
    %5 = vector.load %arg9[%c4, %c0_4] : memref<36x288xf32, #tpu.memory_space<vmem>>, vector<4x288xf32>
    tpu.vector_store %arg9[%c4, %c0_4], %4 {strides = array<i32>} : memref<36x288xf32, #tpu.memory_space<vmem>>, vector<4x288xf32>,
    %6 = vector.extract_strided_slice %1 {offsets = [0, 2], sizes = [4, 288], strides = [1, 1]} : vector<4x326xf32> to vector<4x288xf32>
    %c8 = arith.constant 8 : index
    %c0_5 = arith.constant 0 : index
    %7 = vector.load %arg9[%c8, %c0_5] : memref<36x288xf32, #tpu.memory_space<vmem>>, vector<4x288xf32>
    tpu.vector_store %arg9[%c8, %c0_5], %6 {strides = array<i32>} : memref<36x288xf32, #tpu.memory_space<vmem>>, vector<4x288xf32>,
    %8 = vector.extract_strided_slice %1 {offsets = [0, 18], sizes = [4, 288], strides = [1, 1]} : vector<4x326xf32> to vector<4x288xf32>
    %c12 = arith.constant 12 : index
    %c0_6 = arith.constant 0 : index
    %9 = vector.load %arg9[%c12, %c0_6] : memref<36x288xf32, #tpu.memory_space<vmem>>, vector<4x288xf32>
    tpu.vector_store %arg9[%c12, %c0_6], %8 {strides = array<i32>} : memref<36x288xf32, #tpu.memory_space<vmem>>, vector<4x288xf32>,
    %10 = vector.extract_strided_slice %1 {offsets = [0, 19], sizes = [4, 288], strides = [1, 1]} : vector<4x326xf32> to vector<4x288xf32>
    %c16 = arith.constant 16 : index
    %c0_7 = arith.constant 0 : index
    %11 = vector.load %arg9[%c16, %c0_7] : memref<36x288xf32, #tpu.memory_space<vmem>>, vector<4x288xf32>
    tpu.vector_store %arg9[%c16, %c0_7], %10 {strides = array<i32>} : memref<36x288xf32, #tpu.memory_space<vmem>>, vector<4x288xf32>,
    %12 = vector.extract_strided_slice %1 {offsets = [0, 20], sizes = [4, 288], strides = [1, 1]} : vector<4x326xf32> to vector<4x288xf32>
    %c20 = arith.constant 20 : index
    %c0_8 = arith.constant 0 : index
    %13 = vector.load %arg9[%c20, %c0_8] : memref<36x288xf32, #tpu.memory_space<vmem>>, vector<4x288xf32>
    tpu.vector_store %arg9[%c20, %c0_8], %12 {strides = array<i32>} : memref<36x288xf32, #tpu.memory_space<vmem>>, vector<4x288xf32>,
    %14 = vector.extract_strided_slice %1 {offsets = [0, 36], sizes = [4, 288], strides = [1, 1]} : vector<4x326xf32> to vector<4x288xf32>
    %c24 = arith.constant 24 : index
    %c0_9 = arith.constant 0 : index
    %15 = vector.load %arg9[%c24, %c0_9] : memref<36x288xf32, #tpu.memory_space<vmem>>, vector<4x288xf32>
    tpu.vector_store %arg9[%c24, %c0_9], %14 {strides = array<i32>} : memref<36x288xf32, #tpu.memory_space<vmem>>, vector<4x288xf32>,
    %16 = vector.extract_strided_slice %1 {offsets = [0, 37], sizes = [4, 288], strides = [1, 1]} : vector<4x326xf32> to vector<4x288xf32>
    %c28 = arith.constant 28 : index
    %c0_10 = arith.constant 0 : index
    %17 = vector.load %arg9[%c28, %c0_10] : memref<36x288xf32, #tpu.memory_space<vmem>>, vector<4x288xf32>
    tpu.vector_store %arg9[%c28, %c0_10], %16 {strides = array<i32>} : memref<36x288xf32, #tpu.memory_space<vmem>>, vector<4x288xf32>,
    %18 = vector.extract_strided_slice %1 {offsets = [0, 38], sizes = [4, 288], strides = [1, 1]} : vector<4x326xf32> to vector<4x288xf32>
    %c32 = arith.constant 32 : index
    %c0_11 = arith.constant 0 : index
    %19 = vector.load %arg9[%c32, %c0_11] : memref<36x288xf32, #tpu.memory_space<vmem>>, vector<4x288xf32>
    tpu.vector_store %arg9[%c32, %c0_11], %18 {strides = array<i32>} : memref<36x288xf32, #tpu.memory_space<vmem>>, vector<4x288xf32>,
    %c0_12 = arith.constant 0 : index
    %c0_13 = arith.constant 0 : index
    %20 = vector.load %arg9[%c0_12, %c0_13] : memref<36x288xf32, #tpu.memory_space<vmem>>, vector<36x288xf32>
    %c0_14 = arith.constant 0 : index
    %c0_15 = arith.constant 0 : index
    %21 = vector.load %arg3[%c0_14, %c0_15] : memref<8x36xf32, #tpu.memory_space<vmem>>, vector<8x36xf32>
    %cst = arith.constant dense<0.000000e+00> : vector<8x288xf32>
    %22 = tpu.matmul %21, %20, %cst {dimension_numbers = #tpu.dot_dimension_numbers<[1], [0], [0], [1], [0, 0, 1, 1], [], []>} : vector<8x36xf32>, vector<36x288xf32>, vector<8x288xf32> -> vector<8x288xf32>
    %c0_16 = arith.constant 0 : index
    %c0_17 = arith.constant 0 : index
    %23 = vector.load %arg4[%c0_16, %c0_17] : memref<8x1xf32, #tpu.memory_space<vmem>>, vector<8x1xf32>
    %24 = vector.broadcast %23 : vector<8x1xf32> to vector<8x288xf32>
    %25 = arith.addf %22, %24 : vector<8x288xf32>
    %c0_18 = arith.constant 0 : index
    %c0_19 = arith.constant 0 : index
    %c0_20 = arith.constant 0 : index
    %26 = vector.load %arg8[%c0_18, %c0_19, %c0_20] : memref<1x8x288xf32, #tpu.memory_space<vmem>>, vector<1x8x288xf32>
    %27 = vector.shape_cast %26 : vector<1x8x288xf32> to vector<8x288xf32>
    %28 = vector.shape_cast %25 : vector<8x288xf32> to vector<1x8x288xf32>
    tpu.vector_store %arg8[%c0_18, %c0_19, %c0_20], %28 {strides = array<i32>} : memref<1x8x288xf32, #tpu.memory_space<vmem>>, vector<1x8x288xf32>,
    %cst_21 = arith.constant 0.000000e+00 : f32
    %29 = vector.broadcast %cst_21 : f32 to vector<8x288xf32>
    %30 = arith.maximumf %25, %29 : vector<8x288xf32>
    %c0_22 = arith.constant 0 : index
    %c0_23 = arith.constant 0 : index
    %31 = vector.load %arg2[%c0_22, %c0_23] : memref<1x288xf32, #tpu.memory_space<vmem>>, vector<1x288xf32>
    %32 = vector.broadcast %31 : vector<1x288xf32> to vector<8x288xf32>
    %33 = arith.mulf %30, %32 : vector<8x288xf32>
    %cst_24 = arith.constant dense<0.000000e+00> : vector<8xf32>
    %34 = vector.multi_reduction <add>, %33, %cst_24 [1] : vector<8x288xf32> to vector<8xf32>
    %35 = vector.shape_cast %34 : vector<8xf32> to vector<8x1xf32>
    %cst_25 = arith.constant 3.906250e-03 : f32
    %36 = vector.broadcast %cst_25 : f32 to vector<8x1xf32>
    %37 = arith.mulf %35, %36 : vector<8x1xf32>
    %c0_26 = arith.constant 0 : index
    %c0_27 = arith.constant 0 : index
    %38 = vector.load %arg5[%c0_26, %c0_27] : memref<10x8xf32, #tpu.memory_space<vmem>>, vector<10x8xf32>
    %cst_28 = arith.constant dense<0.000000e+00> : vector<10x1xf32>
    %39 = tpu.matmul %38, %37, %cst_28 {dimension_numbers = #tpu.dot_dimension_numbers<[1], [0], [0], [1], [0, 0, 1, 1], [], []>} : vector<10x8xf32>, vector<8x1xf32>, vector<10x1xf32> -> vector<10x1xf32>
    %c0_29 = arith.constant 0 : index
    %c0_30 = arith.constant 0 : index
    %40 = vector.load %arg6[%c0_29, %c0_30] : memref<10x1xf32, #tpu.memory_space<vmem>>, vector<10x1xf32>
    %41 = arith.addf %39, %40 : vector<10x1xf32>
    %c0_31 = arith.constant 0 : index
    %c0_32 = arith.constant 0 : index
    %c0_33 = arith.constant 0 : index
    %42 = vector.load %arg7[%c0_31, %c0_32, %c0_33] : memref<1x10x1xf32, #tpu.memory_space<vmem>>, vector<1x10x1xf32>
    %43 = vector.shape_cast %42 : vector<1x10x1xf32> to vector<10x1xf32>
    %44 = vector.shape_cast %41 : vector<10x1xf32> to vector<1x10x1xf32>
    tpu.vector_store %arg7[%c0_31, %c0_32, %c0_33], %44 {strides = array<i32>} : memref<1x10x1xf32, #tpu.memory_space<vmem>>, vector<1x10x1xf32>,
    return
  }
  func.func @transform_0(%arg0: i32) -> (i32, i32, i32) {
    %c0_i32 = arith.constant 0 : i32
    %c0_i32_0 = arith.constant 0 : i32
    %c0_i32_1 = arith.constant 0 : i32
    return %arg0, %c0_i32, %c0_i32_0 : i32, i32, i32
  }
  func.func @transform_1(%arg0: i32) -> (i32, i32) {
    %c0_i32 = arith.constant 0 : i32
    %c0_i32_0 = arith.constant 0 : i32
    %c0_i32_1 = arith.constant 0 : i32
    return %c0_i32, %c0_i32_0 : i32, i32
  }
  func.func @transform_2(%arg0: i32) -> (i32, i32) {
    %c0_i32 = arith.constant 0 : i32
    %c0_i32_0 = arith.constant 0 : i32
    %c0_i32_1 = arith.constant 0 : i32
    return %c0_i32, %c0_i32_0 : i32, i32
  }
  func.func @transform_3(%arg0: i32) -> (i32, i32) {
    %c0_i32 = arith.constant 0 : i32
    %c0_i32_0 = arith.constant 0 : i32
    %c0_i32_1 = arith.constant 0 : i32
    return %c0_i32, %c0_i32_0 : i32, i32
  }
  func.func @transform_4(%arg0: i32) -> (i32, i32) {
    %c0_i32 = arith.constant 0 : i32
    %c0_i32_0 = arith.constant 0 : i32
    %c0_i32_1 = arith.constant 0 : i32
    return %c0_i32, %c0_i32_0 : i32, i32
  }
  func.func @transform_5(%arg0: i32) -> (i32, i32) {
    %c0_i32 = arith.constant 0 : i32
    %c0_i32_0 = arith.constant 0 : i32
    %c0_i32_1 = arith.constant 0 : i32
    return %c0_i32, %c0_i32_0 : i32, i32
  }
  func.func @transform_6(%arg0: i32) -> (i32, i32, i32) {
    %c0_i32 = arith.constant 0 : i32
    %c0_i32_0 = arith.constant 0 : i32
    %c0_i32_1 = arith.constant 0 : i32
    return %arg0, %c0_i32, %c0_i32_0 : i32, i32, i32
  }
  func.func @transform_7(%arg0: i32) -> (i32, i32, i32) {
    %c0_i32 = arith.constant 0 : i32
    %c0_i32_0 = arith.constant 0 : i32
    %c0_i32_1 = arith.constant 0 : i32
    return %arg0, %c0_i32, %c0_i32_0 : i32, i32, i32
  }
}

</mosaic_0001>

<bundles_post_ra>
// kernel: gradcam_forward.1
= control target key start
LH: loop header
LB: loop body
LE: loop exit
PB: predicated region body
PF: predicated region fallthrough
CT: control target
= control target key end

     0   :  { %s959_s24 = smov 0   ;;  %s1033_s0 = inlined_call_operand.vmem [shape: f32[2,4,326], index: 0, kind: input, shape index: {}]   ;;  %s1034_s1 = inlined_call_operand.vmem [shape: f32[1,288], index: 1, kind: input, shape index: {}]   ;;  %s1035_s2 = inlined_call_operand.vmem [shape: f32[8,36], index: 2, kind: input, shape index: {}]   ;;  %s1036_s3 = inlined_call_operand.vmem [shape: f32[8,1], index: 3, kind: input, shape index: {}]   ;;  %s1037_s4 = inlined_call_operand.vmem [shape: f32[10,8], index: 4, kind: input, shape index: {}]   ;;  %s1038_s5 = inlined_call_operand.vmem [shape: f32[10,1], index: 5, kind: input, shape index: {}]   ;;  %s1039_s6 = inlined_call_operand.vmem [shape: f32[2,10,1], index: 6, kind: output, shape index: {0}]   ;;  %s1040_s7 = inlined_call_operand.vmem [shape: f32[2,8,288], index: 7, kind: output, shape index: {1}]  }
   0x1 LB: > { %s813_s25 = sadd.s32 4294967295, %s905_s24   ;;  %p817_p0 = scmp.ge.s32.totalorder %s905_s24, 1  ;;  %s905_s24 = sphi %s959_s24, %s18_s24  }
   0x2   : > { %p240_p1 = scmp.lt.s32.totalorder %s905_s24, 3 }
   0x4   : > { %p241_p2 = pnand %p817_p0, %p240_p1 }
   0x5   : > { %p277_p3 = scmp.lt.s32.totalorder (!%p241_p2), %s813_s25, 1  ;;  %vm300_vm0 = vcmask (!%p241_p2), 257024   ;;  %s907_s30 = smov (!%p241_p2), 126   ;;  %v910_v4 = vmov (!%p241_p2), 0.0|0.0   ;;  %v915_v6 = vmov (!%p241_p2), 0.0   ;;  %vm917_vm1 = vmmov (!%p241_p2), 0  }
   0x6   : > { %244 = sbr.rel (%p241_p2) target bundleno = 774 (0x306), region = 44  ;;  %s908_s8 = smov (!%p241_p2), 127   ;;  %867 = vmatprep.subr.bf16.mxu1 (!%p241_p2), %v910_v4  ;;  %525 = vmatprep.mubr.f32.mxu0 (!%p241_p2), %v915_v6  ;;  %v918_v7 = vmov (!%p241_p2), 0   ;;  %v441_v8 = vld [vmem:[%s1036_s3] sm:$0xff] (!%p241_p2)  ;;  %vm326_vm2 = vcmask (!%p241_p2), 1031168   ;;  %vm310_vm3 = vcmask (!%p241_p2), 1039360  }
   0x7   : > { %s909_s9 = smov (!%p241_p2), 110   ;;  %s911_s10 = smov (!%p241_p2), 109   ;;  %851 = vmatprep.mubr.msk.f32.mxu1 (!%p241_p2), %vm917_vm1, %v915_v6  ;;  %895 = vset.pattern.permute.xlu0 (!%p241_p2), %v918_v7  ;;  %vm318_vm4 = vcmask (!%p241_p2), 261124   ;;  %vm341_vm5 = vcmask (!%p241_p2), 900096   ;;  %vm356_vm6 = vcmask (!%p241_p2), 891904   ;;  %vm371_vm7 = vcmask (!%p241_p2), 883712  }
   0x8   : > { %s912_s11 = smov (!%p241_p2), 108   ;;  %s913_s12 = smov (!%p241_p2), 92   ;;  %vm386_vm8 = vcmask (!%p241_p2), 752640   ;;  %vm401_vm9 = vcmask (!%p241_p2), 744448   ;;  %vm416_vm10 = vcmask (!%p241_p2), 736256   ;;  %vm451_vm11 = vcmask (!%p241_p2), 1043456  }
   0x9   : > { %s914_s13 = smov (!%p241_p2), 91   ;;  %s916_s14 = smov (!%p241_p2), 90   ;;  %vm447_vm12 = vcmask (!%p241_p2), 293888   ;;  %v611_v7 = vlaneseq (!%p241_p2)  ;;  %vm604_vm13 = vcmask (!%p241_p2), 261120   ;;  %vm639_vm14 = vcmask (!%p241_p2), 64512  }
   0xa   : > { %vm723_vm15 = vcmask (!%p241_p2), 1024  }
   0xd   : > { %s1042_s25 = smov (!%p277_p3, %s813_s25), 1 }
   0xe   : > { %s873_s26 = smul.u32 12, %s1042_s25 }
   0xf   : > { %s874_s19 = smul.u32 24, %s1042_s25 }
  0x10   : > { %s281_s29 = scalar_lea.vmem %s1033_s0, %s873_s26 }
  0x11   : > { %v293_v0 = vld [vmem:[%s281_s29 + $0x8] sm:$0xf]  ;;  %v292_v1 = vld [vmem:[%s281_s29] sm:$0xff]  ;;  %s291_s26 = scalar_lea.vmem %s1040_s7, %s874_s19 }
  0x12   : > { %324 = vrot.lane.b32.xlu1 %v293_v0, %s907_s30  ;;  %298 = vst [vmem:[#allocation2] sm:$0xf] %v292_v1  ;;  %306 = vrot.lane.b32.xlu0 %v292_v1, %s908_s8  ;;  %v296_v2 = vcombine.high %v292_v1, %v292_v1  ;;  %301 = vst.msk [vmem:[#allocation2 + $0x10] sm:$0xf] %vm300_vm0, %v293_v0  ;;  %v303_v3 = vcombine.low %v293_v0, %v293_v0 }
  0x13   : > { %v302_v5 = vcombine.low %v292_v1, %v292_v1 }
  0x14   : > { %299 = vst [vmem:[#allocation2 + $0x8] sm:$0xf] %v296_v2 }
  0x16   : > { %337 = vrot.lane.b32.xlu0 %v292_v1, %s909_s9  ;;  %322 = vrot.lane.b32.xlu1 %v296_v2, %s907_s30 }
  0x1a   : > { %308 = vrot.lane.b32.xlu0 %v303_v3, %s908_s8  ;;  %339 = vrot.lane.b32.xlu1 %v303_v3, %s909_s9 }
  0x1e   : > { %304 = vrot.lane.b32.xlu0 %v302_v5, %s908_s8  ;;  %320 = vrot.lane.b32.xlu1 %v292_v1, %s907_s30  ;;  %s831_s8 = sshll.u32 %s1042_s25, 4 }
  0x1f   : > { %s286_s15 = scalar_lea.vmem %s1039_s6, %s831_s8 }
  0x22   : > { %335 = vrot.lane.b32.xlu0 %v302_v5, %s909_s9  ;;  %352 = vrot.lane.b32.xlu1 %v296_v2, %s911_s10 }
  0x26   : > { %354 = vrot.lane.b32.xlu0 %v293_v0, %s911_s10  ;;  %367 = vrot.lane.b32.xlu1 %v292_v1, %s912_s11 }
  0x2a   : > { %369 = vrot.lane.b32.xlu0 %v303_v3, %s912_s11  ;;  %382 = vrot.lane.b32.xlu1 %v296_v2, %s913_s12 }
  0x2e   : > { %384 = vrot.lane.b32.xlu0 %v293_v0, %s913_s12  ;;  %397 = vrot.lane.b32.xlu1 %v292_v1, %s914_s13 }
  0x32   : > { %399 = vrot.lane.b32.xlu0 %v303_v3, %s914_s13  ;;  %350 = vrot.lane.b32.xlu1 %v292_v1, %s911_s10  ;;  %v440_v3 = vld [vmem:[%s1035_s2] sm:$0xff] }
  0x36   : > { %365 = vrot.lane.b32.xlu0 %v302_v5, %s912_s11  ;;  %380 = vrot.lane.b32.xlu1 %v292_v1, %s913_s12 }
  0x3a   : > { %395 = vrot.lane.b32.xlu0 %v302_v5, %s914_s13  ;;  %412 = vrot.lane.b32.xlu1 %v296_v2, %s916_s14 }
  0x3e   : > { %414 = vrot.lane.b32.xlu0 %v293_v0, %s916_s14  ;;  %410 = vrot.lane.b32.xlu1 %v292_v1, %s916_s14 }
  0x42   : > { %444 = vperm.xlu0 %895, %v441_v8   ;;  %v612_v8 = vshrl.u32 %v611_v7, 7 }
  0x84   : > { %v325_v9 = vpop.permute.xlu1 %324  ;;  %v307_v10 = vpop.permute.xlu0 %306 }
  0x85   : > { %334 = vst.msk [vmem:[#allocation2 + $0x28] sm:$0xf] %vm300_vm0, %v325_v9 }
  0x88   : > { %v338_v11 = vpop.permute.xlu0 %337  ;;  %v323_v12 = vpop.permute.xlu1 %322 }
  0x89   : > { %v328_v13 = vsel %vm326_vm2, %v323_v12, %v325_v9 }
  0x8a   : > { %333 = vst [vmem:[#allocation2 + $0x20] sm:$0xf] %v328_v13 }
  0x8c   : > { %v309_v14 = vpop.permute.xlu0 %308  ;;  %v340_v15 = vpop.permute.xlu1 %339 }
  0x8d   : > { %v312_v16 = vsel %vm310_vm3, %v307_v10, %v309_v14  ;;  %319 = vst.msk [vmem:[#allocation2 + $0x10] sm:$0xf0] %vm318_vm4, %v309_v14  ;;  %v343_v17 = vsel %vm341_vm5, %v338_v11, %v340_v15  ;;  %349 = vst.msk [vmem:[#allocation2 + $0x28] sm:$0xf0] %vm318_vm4, %v340_v15  ;;  %v617_v14 = vsub.s32 1, %v612_v8 }
  0x8e   : > { %317 = vst [vmem:[#allocation2 + $0x8] sm:$0xf0] %v312_v16  ;;  %348 = vst [vmem:[#allocation2 + $0x20] sm:$0xf0] %v343_v17 }
  0x90   : > { %v305_v18 = vpop.permute.xlu0 %304  ;;  %v321_v19 = vpop.permute.xlu1 %320 }
  0x91   : > { %v311_v20 = vsel %vm310_vm3, %v305_v18, %v307_v10  ;;  %v327_v21 = vsel %vm326_vm2, %v321_v19, %v323_v12  ;;  %v621_v10 = vsub.s32 2, %v612_v8  ;;  %v613_v12 = vsub.s32 0, %v612_v8 }
  0x92   : > { %316 = vst [vmem:[#allocation2] sm:$0xf0] %v311_v20  ;;  %332 = vst [vmem:[#allocation2 + $0x18] sm:$0xf] %v327_v21 }
  0x94   : > { %v336_v22 = vpop.permute.xlu0 %335  ;;  %v353_v23 = vpop.permute.xlu1 %352  ;;  %v427_v24 = vld [vmem:[#allocation2 + $0x10] sm:$0xff]  ;;  %v430_v25 = vld [vmem:[#allocation2 + $0x28] sm:$0xff] }
  0x95   : > { %v342_v26 = vsel %vm341_vm5, %v336_v22, %v338_v11  ;;  %v868_v27 = vpack.c.bf16 %v430_v25, %v427_v24  ;;  %v426_v28 = vld [vmem:[#allocation2 + $0x8] sm:$0xff]  ;;  %v429_v29 = vld [vmem:[#allocation2 + $0x20] sm:$0xff] }
  0x96   : > { %347 = vst [vmem:[#allocation2 + $0x18] sm:$0xf0] %v342_v26  ;;  %v859_v30 = vpack.c.bf16 %v429_v29, %v426_v28  ;;  %v609_v11 = vld [vmem:[%s1034_s1] sm:$0x7] }
  0x97   : > { %869 = vmatpush3.bf16.msra.mxu1 %v868_v27  ;;  %v622_v17 = vrot.slane %v609_v11, %v621_v10  ;;  %v614_v21 = vrot.slane %v609_v11, %v613_v12  ;;  %v618_v24 = vrot.slane %v609_v11, %v617_v14 }
  0x98   : > { %v355_v31 = vpop.permute.xlu0 %354  ;;  %v368_v32 = vpop.permute.xlu1 %367  ;;  %860 = vmatprep.subr.bf16.mxu0 %v859_v30  ;;  %870 = vmatprep.subr.bf16.mxu1 %v910_v4 }
  0x99   : > { %v358_v33 = vsel %vm356_vm6, %v353_v23, %v355_v31  ;;  %364 = vst.msk [vmem:[#allocation2 + $0x40] sm:$0xf] %vm300_vm0, %v355_v31  ;;  %v425_v37 = vld [vmem:[#allocation2] sm:$0xff] }
  0x9a   : > { %363 = vst [vmem:[#allocation2 + $0x38] sm:$0xf] %v358_v33  ;;  %v635_v33 = vld [vmem:[%s1037_s4] sm:$0xff] }
  0x9c   : > { %v370_v34 = vpop.permute.xlu0 %369  ;;  %v383_v35 = vpop.permute.xlu1 %382 }
  0x9d   : > { %v373_v36 = vsel %vm371_vm7, %v368_v32, %v370_v34  ;;  %379 = vst.msk [vmem:[#allocation2 + $0x40] sm:$0xf0] %vm318_vm4, %v370_v34  ;;  %v428_v38 = vld [vmem:[#allocation2 + $0x18] sm:$0xff] }
  0x9e   : > { %378 = vst [vmem:[#allocation2 + $0x38] sm:$0xf0] %v373_v36  ;;  %v861_v39 = vpack.c.bf16 %v428_v38, %v425_v37  ;;  %v636_v36 = vld [vmem:[%s1037_s4 + $0x8] sm:$0x3]  ;;  %v637_v38 = vld [vmem:[%s1038_s5] sm:$0xff] }
  0x9f   : > { %v638_v37 = vld [vmem:[%s1038_s5 + $0x8] sm:$0x3] }
  0xa0   : > { %v385_v40 = vpop.permute.xlu0 %384  ;;  %v398_v41 = vpop.permute.xlu1 %397  ;;  %862 = vmatpush1.bf16.msra.mxu0 %v861_v39 }
  0xa1   : > { %v388_v42 = vsel %vm386_vm8, %v383_v35, %v385_v40  ;;  %394 = vst.msk [vmem:[#allocation2 + $0x58] sm:$0xf] %vm300_vm0, %v385_v40 }
  0xa2   : > { %393 = vst [vmem:[#allocation2 + $0x50] sm:$0xf] %v388_v42 }
  0xa4   : > { %v400_v43 = vpop.permute.xlu0 %399  ;;  %v351_v44 = vpop.permute.xlu1 %350  ;;  %v433_v53 = vld [vmem:[#allocation2 + $0x40] sm:$0xff] }
  0xa5   : > { %v403_v45 = vsel %vm401_vm9, %v398_v41, %v400_v43  ;;  %409 = vst.msk [vmem:[#allocation2 + $0x58] sm:$0xf0] %vm318_vm4, %v400_v43  ;;  %v357_v46 = vsel %vm356_vm6, %v351_v44, %v353_v23  ;;  %v432_v57 = vld [vmem:[#allocation2 + $0x38] sm:$0xff] }
  0xa6   : > { %408 = vst [vmem:[#allocation2 + $0x50] sm:$0xf0] %v403_v45  ;;  %362 = vst [vmem:[#allocation2 + $0x30] sm:$0xf] %v357_v46 }
  0xa8   : > { %v366_v47 = vpop.permute.xlu0 %365  ;;  %v381_v48 = vpop.permute.xlu1 %380 }
  0xa9   : > { %v372_v49 = vsel %vm371_vm7, %v366_v47, %v368_v32  ;;  %v387_v50 = vsel %vm386_vm8, %v381_v48, %v383_v35 }
  0xaa   : > { %377 = vst [vmem:[#allocation2 + $0x30] sm:$0xf0] %v372_v49  ;;  %392 = vst [vmem:[#allocation2 + $0x48] sm:$0xf] %v387_v50 }
  0xac   : > { %v396_v51 = vpop.permute.xlu0 %395  ;;  %v413_v52 = vpop.permute.xlu1 %412  ;;  %v436_v54 = vld [vmem:[#allocation2 + $0x58] sm:$0xff] }
  0xad   : > { %v402_v55 = vsel %vm401_vm9, %v396_v51, %v398_v41  ;;  %v871_v56 = vpack.c.bf16 %v436_v54, %v433_v53  ;;  %v435_v58 = vld [vmem:[#allocation2 + $0x50] sm:$0xff] }
  0xae   : > { %407 = vst [vmem:[#allocation2 + $0x48] sm:$0xf0] %v402_v55  ;;  %v863_v59 = vpack.c.bf16 %v435_v58, %v432_v57 }
  0xaf   : > { %872 = vmatpush3.bf16.msra.mxu1 %v871_v56 }
  0xb0   : > { %v415_v60 = vpop.permute.xlu0 %414  ;;  %v411_v61 = vpop.permute.xlu1 %410  ;;  %864 = vmatprep.subr.bf16.mxu0 %v863_v59  ;;  %849 = vmatprep.subr.mxu1 %v915_v6 }
  0xb1   : > { %v418_v62 = vsel %vm416_vm10, %v413_v52, %v415_v60  ;;  %424 = vst.msk [vmem:[#allocation2 + $0x70] sm:$0xf] %vm300_vm0, %v415_v60  ;;  %v417_v63 = vsel %vm416_vm10, %v411_v61, %v413_v52  ;;  %v431_v0 = vld [vmem:[#allocation2 + $0x30] sm:$0xff]  ;;  %vm721_vm0 = vcmask 7168  }
  0xb2   : > { %423 = vst [vmem:[#allocation2 + $0x68] sm:$0xf] %v418_v62  ;;  %422 = vst [vmem:[#allocation2 + $0x60] sm:$0xf] %v417_v63 }
  0xb5   : > { %v434_v1 = vld [vmem:[#allocation2 + $0x48] sm:$0xff] }
  0xb6   : > { %v865_v2 = vpack.c.bf16 %v434_v1, %v431_v0 }
  0xb8   : > { %866 = vmatpush1.bf16.msra.mxu0 %v865_v2  ;;  %v439_v4 = vld [vmem:[#allocation2 + $0x70] sm:$0xf] }
  0xb9   : > { %v438_v5 = vld [vmem:[#allocation2 + $0x68] sm:$0xf]  ;;  %850 = vmatpush3.msk.msra.mxu1 %vm451_vm11, %v439_v4  ;;  %v437_v6 = vld [vmem:[#allocation2 + $0x60] sm:$0xf] }
  0xba   : > { %822 = vmatprep.subr.msk.mxu0 %vm451_vm11, %v438_v5  ;;  %852 = vmatmul.mubr.msk.f32.vlgmr.msra.gmra.mrb[0].mxu1 %vm447_vm12, %v440_v3 }
  0xbc   : > { %823 = vmatpush1.msk.msra.mxu0 %vm451_vm11, %v437_v6 }
  0xbd   : > { %824 = vmatmul.mubr.msk.f32.vlgmr.msra.gmra.mrb[0].mxu0 %vm447_vm12, %v440_v3 }
  0xbe   : > { %856 = vmatprep.mubr.msk.f32.mxu0 %vm639_vm14, %v635_v33 }
  0xc1   : > { %v445_v9 = vpop.permute.xlu0 %444 }
 0x18d   : > { %v598_v13 = vpop.f32.mrb[0].mxu1 }
 0x18e   : > { %v599_v15 = vadd.f32 %v598_v13, %v445_v9  ;;  %v853_v16 = vpop.f32.mrb[1].mxu1 }
 0x190   : > { %v527_v18 = vpop.f32.mrb[0].mxu0  ;;  %v608_v19 = vmax.f32 %v599_v15, 0.0  ;;  %605 = vst.msk [vmem:[%s291_s26 + $0x10] sm:$0xff] %vm604_vm13, %v599_v15 }
 0x191   : > { %v528_v20 = vadd.f32 %v527_v18, %v445_v9  ;;  %v529_v22 = vpop.f32.mrb[1].mxu0 }
 0x192   : > { %v530_v23 = vadd.f32 %v529_v22, %v445_v9  ;;  %v628_v26 = vmul.f32 %v622_v17, %v608_v19 }
 0x193   : > { %602 = vst [vmem:[%s291_s26] sm:$0xff] %v528_v20  ;;  %v606_v25 = vmax.f32 %v528_v20, 0.0 }
 0x194   : > { %603 = vst [vmem:[%s291_s26 + $0x8] sm:$0xff] %v530_v23  ;;  %v607_v27 = vmax.f32 %v530_v23, 0.0  ;;  %v630_v30 = vsel %vm604_vm13, %v628_v26, 0.0 }
 0x195   : > { %v626_v28 = vmul.f32 %v614_v21, %v606_v25 }
 0x196   : > { %v627_v29 = vmul.f32 %v618_v24, %v607_v27 }
 0x198   : > { %v629_v31 = vadd.f32 %v627_v29, %v626_v28 }
 0x19a   : > { %v631_v32 = vadd.f32 %v630_v30, %v629_v31 }
 0x19c   : > { %632 = vadd.xlane.f32.xlu1 %v631_v32 }
 0x229   : > { %v633_v34 = vpop.xlane.xlu1 %632 }
 0x22a   : > { %v634_v35 = vmul.f32 0.00390625, %v633_v34 }
 0x22c   : > { %854 = vmatprep.subr.mxu0 %v634_v35 }
 0x22d   : > { %855 = vmatpush3.msra.mxu0 %v634_v35 }
 0x22e   : > { %857 = vmatmul.mubr.msk.f32.vlgmr.msra.gmra.mrb[2].mxu0 %vm639_vm14, %v636_v36 }
 0x301   : > { %v858_v39 = vpop.f32.mrb[2].mxu0 }
 0x302   : > { %v718_v40 = vadd.f32 %v858_v39, %v638_v37  ;;  %v712_v41 = vpop.f32.mrb[3].mxu0 }
 0x303   : > { %v713_v42 = vadd.f32 %v712_v41, %v637_v38 }
 0x304   : > { %724 = vst.msk [vmem:[%s286_s15 + $0x8] sm:$0x3] %vm723_vm15, %v718_v40 }
 0x305   : > { %722 = vst.msk [vmem:[%s286_s15] sm:$0xff] %vm721_vm0, %v713_v42 }
 0x306 PF: > { %s18_s24 = sadd.s32 1, %s905_s24  }
 0x307   : > { %p15_p4 = scmp.ge.s32.totalorder %s18_s24, 4  }
 0x309   :  { %17 = sbr.rel (!%p15_p4) target bundleno = 1 (0x1), region = 86 }

</bundles_post_ra>
